<compile_context>
chip_gen: v7x
topology: tpu7x:2x2x1
jax: 0.10.0
libtpu: 0.0.40
codegen_flags: <defaults>
</compile_context>

<pallas_src>
import jax
import jax.numpy as jnp
import numpy as np
from jax import lax
from jax.experimental import pallas as pl
from jax.experimental.pallas import tpu as pltpu

_LANE, _SUB = 128, 8


def _round_up(n: int, m: int) -> int:
    return ((n + m - 1) // m) * m


def _vmem_tile_bytes(rows: int, cols: int, itemsize: int = 4) -> int:
    # f32 VMEM blocks are laid out in (8, 128) tiles -> both minor dims pad.
    return _round_up(max(rows, 1), _SUB) * _round_up(max(cols, 1), _LANE) * itemsize


def _choose_tile(batch: int, max_tile_b: int):
    """Pick (tile_b, grid_steps): big balanced tiles, >=2 steps for large B."""
    max_tile_b = max(_LANE, min(int(max_tile_b), 32768))
    # >=2 steps once the batch is big enough that two steps still amortize the
    # ~0.35us/step overhead -> keeps both v7x TensorCores busy.
    min_steps = 2 if batch >= 4096 else 1
    steps = max(min_steps, pl.cdiv(batch, max_tile_b))
    if steps == 1:
        return batch, 1                       # one full-batch block, no padding
    tile_b = _round_up(pl.cdiv(batch, steps), _LANE)   # balanced, lane-aligned
    return tile_b, pl.cdiv(batch, tile_b)


def _make_fc_kernel(num_extra_hidden: int):
    """Fused forward kernel; `num_extra_hidden` = layers - 1 (static)."""

    def body(x_ref, w0_ref, wh_ref, wl_ref, b_ref, out_ref):
        # x_ref  : (TILE_B, D) f32   natural row-major input tile
        # w0_ref : (Q, D)            torch (out, in) layout
        # wh_ref : (L-1, Q, Q) or None
        # wl_ref : (2, Q)
        # b_ref  : (2,) f32 SMEM     last-layer bias (2 scalars)
        # out_ref: (2, TILE_B) f32   feature-major probabilities (lane-dense)

        # Layer 0: contract the D axis of BOTH operands (A @ B^T form, the
        # same dot shape as attention scores) -> result is already
        # feature-major (Q, TILE_B) with the batch on the lane axis; no
        # explicit transpose of x is materialized.
        h = lax.dot_general(w0_ref[...], x_ref[...],
                            dimension_numbers=(((1,), (1,)), ((), ())),
                            preferred_element_type=jnp.float32)   # (Q, TILE_B)
        h = jnp.maximum(h, 0.0)

        # Hidden layers 1..L-1 (statically unrolled), plain NN matmuls.
        for i in range(num_extra_hidden):
            h = jnp.dot(wh_ref[i], h, preferred_element_type=jnp.float32)
            h = jnp.maximum(h, 0.0)

        # Last layer Linear(q->2, bias) + 2-class softmax.  A 2-class softmax
        # only depends on the logit difference:
        #   softmax = [1 - sigmoid(diff), sigmoid(diff)],
        #   diff = (l1 + b1) - (l0 + b0)
        # which removes the cross-lane max/exp-sum reduces of a full softmax.
        logits = jnp.dot(wl_ref[...], h, preferred_element_type=jnp.float32)  # (2, TILE_B)
        diff = logits[1:2, :] - logits[0:1, :] + (b_ref[1] - b_ref[0])
        p1 = 1.0 / (1.0 + jnp.exp(-diff))     # exact f32; exp runs on the EUP slot
        out_ref[0:1, :] = 1.0 - p1            # direct row writes (no concatenate)
        out_ref[1:2, :] = p1

    if num_extra_hidden > 0:
        def kernel(x_ref, w0_ref, wh_ref, wl_ref, b_ref, out_ref):
            body(x_ref, w0_ref, wh_ref, wl_ref, b_ref, out_ref)
    else:
        # layers == 1: no dummy weight arg -> no pointless DMA / VMEM buffer.
        def kernel(x_ref, w0_ref, wl_ref, b_ref, out_ref):
            body(x_ref, w0_ref, None, wl_ref, b_ref, out_ref)
    return kernel


def fc_network_forward(x, w0, wh, wl, b, *, max_tile_b=16384,
                       feature_major_output=False):
    """
    x  : (B, D) f32            input rows (natural PyTorch layout, read as-is)
    w0 : (Q, D) f32            hidden layer 0 weight, torch (out, in) layout
    wh : (L-1, Q, Q) or None   remaining hidden weights, torch layout
    wl : (2, Q) f32            last layer weight
    b  : (2,)   f32            last layer bias
    returns (B, 2) f32 softmax probabilities (torch convention), or the
    kernel's native lane-dense (2, B) result if feature_major_output=True
    (zero post-kernel HBM passes).
    """
    B, D = x.shape
    Q = w0.shape[0]
    OUT = wl.shape[0]
    num_extra = 0 if wh is None else int(wh.shape[0])

    tile_b, steps = _choose_tile(B, max_tile_b)

    def resident(shape):
        # Full block + constant index_map -> stays resident in VMEM across steps.
        if len(shape) == 2:
            return pl.BlockSpec(shape, lambda i: (0, 0))
        return pl.BlockSpec(shape, lambda i: (0, 0, 0))

    in_specs = [pl.BlockSpec((tile_b, D), lambda i: (i, 0)),   # x rows, natural layout
                resident(tuple(w0.shape))]
    args = [x.astype(jnp.float32), w0.astype(jnp.float32)]
    if num_extra > 0:
        in_specs.append(resident(tuple(wh.shape)))
        args.append(wh.astype(jnp.float32))
    in_specs += [resident(tuple(wl.shape)),
                 pl.BlockSpec(memory_space=pltpu.MemorySpace.SMEM)]   # bias: 2 scalars
    args += [wl.astype(jnp.float32), b.astype(jnp.float32)]

    # VMEM budget from the real tile footprint (the (tile_b, D) block is
    # lane-padded to 128 in VMEM); capped below v7x's 64 MiB/TC.
    vmem_est = (
        2 * _vmem_tile_bytes(tile_b, D)             # double-buffered x tile
        + 2 * _vmem_tile_bytes(OUT, tile_b)         # double-buffered out tile
        + 2 * (_vmem_tile_bytes(Q, D)
               + num_extra * _vmem_tile_bytes(Q, Q)
               + _vmem_tile_bytes(OUT, Q))          # resident weights
        + 3 * _vmem_tile_bytes(Q, tile_b)           # live activations in the body
    )
    vmem_limit = int(min(vmem_est + (8 << 20), 56 << 20))

    # Advisory cost hint: memory-bound, tiny flops, one exp per row.
    weight_bytes = 4 * (w0.size + (wh.size if wh is not None else 0)
                        + wl.size + b.size)
    cost = pl.CostEstimate(
        flops=2 * B * (D * Q + num_extra * Q * Q + Q * OUT),
        transcendentals=B,
        bytes_accessed=B * (D + OUT) * 4 + int(weight_bytes))

    kernel = _make_fc_kernel(num_extra)

    out_fm = pl.pallas_call(
        kernel,
        out_shape=jax.ShapeDtypeStruct((OUT, B), jnp.float32),
        grid=(steps,),
        in_specs=in_specs,
        out_specs=pl.BlockSpec((OUT, tile_b), lambda i: (0, i)),
        compiler_params=pltpu.CompilerParams(
            dimension_semantics=("parallel",),
            vmem_limit_bytes=vmem_limit),
        cost_estimate=cost,
    )(*args)

    if feature_major_output:
        return out_fm           # (2, B): no post-kernel passes at all
    return out_fm.T             # torch (B, 2) convention: one cheap transpose


# ---------------------------------------------------------------------------
# Deterministic parameter init (xavier_normal_-style, as in the module) and a
# pure-JAX reference mirroring the torch forward.
# ---------------------------------------------------------------------------
def init_params(key, d, q, layers, out=2):
    keys = jax.random.split(key, layers + 2)

    def xavier_normal(k, fan_out, fan_in):
        std = (2.0 / (fan_in + fan_out)) ** 0.5
        return std * jax.random.normal(k, (fan_out, fan_in), dtype=jnp.float32)

    w0 = xavier_normal(keys[0], q, d)                               # (Q, D)
    wh = (jnp.stack([xavier_normal(keys[1 + i], q, q) for i in range(layers - 1)])
          if layers > 1 else None)                                  # (L-1, Q, Q)
    wl = xavier_normal(keys[layers], out, q)                        # (2, Q)
    b = 0.1 * jax.random.normal(keys[layers + 1], (out,), dtype=jnp.float32)
    return w0, wh, wl, b


def reference_forward(x, w0, wh, wl, b):
    h = jnp.maximum(x @ w0.T, 0.0)
    if wh is not None:
        for i in range(wh.shape[0]):
            h = jnp.maximum(h @ wh[i].T, 0.0)
    logits = h @ wl.T + b
    return jax.nn.softmax(logits, axis=-1)


if __name__ == "__main__":
    D, Q, LAYERS = 4, 32, 2
    key = jax.random.PRNGKey(0)
    k_small, k_big, k_p = jax.random.split(key, 3)

    w0, wh, wl, b = init_params(k_p, D, Q, LAYERS)

    # 1) tiny batch like the original script (np.random.rand(5, d)): a single
    #    full-batch grid step, exact f32, torch (B, 2) output layout.
    x_small = jax.random.uniform(k_small, (5, D), dtype=jnp.float32)
    out_small = jax.block_until_ready(fc_network_forward(x_small, w0, wh, wl, b))
    np.testing.assert_allclose(
        np.asarray(out_small),
        np.asarray(reference_forward(x_small, w0, wh, wl, b)),
        rtol=1e-5, atol=1e-5)

    # 2) batch exercising a multi-step grid with a masked partial final block
    #    (cdiv(1000, 256) = 4 steps, last block only 232 valid rows).
    x_big = jax.random.uniform(k_big, (1000, D), dtype=jnp.float32)
    ref_big = reference_forward(x_big, w0, wh, wl, b)
    out_big = jax.block_until_ready(
        fc_network_forward(x_big, w0, wh, wl, b, max_tile_b=256))
    np.testing.assert_allclose(np.asarray(out_big), np.asarray(ref_big),
                               rtol=1e-5, atol=1e-5)

    # 3) zero-extra-pass feature-major output path with the default big tiles.
    out_fm = jax.block_until_ready(
        fc_network_forward(x_big, w0, wh, wl, b, feature_major_output=True))
    np.testing.assert_allclose(np.asarray(out_fm.T), np.asarray(ref_big),
                               rtol=1e-5, atol=1e-5)
    np.testing.assert_allclose(np.asarray(out_fm).sum(axis=0),
                               np.ones(x_big.shape[0]), rtol=1e-5)

    print("KERNEL_OK")
</pallas_src>

<mosaic_0001>
module attributes {stable_mosaic.version = 11 : i64} {
  func.func @kernel(%arg0: i32, %arg1: memref<5x4xf32, #tpu.memory_space<vmem>>, %arg2: memref<32x4xf32, #tpu.memory_space<vmem>>, %arg3: memref<1x32x32xf32, #tpu.memory_space<vmem>>, %arg4: memref<2x32xf32, #tpu.memory_space<vmem>>, %arg5: memref<2xf32, #tpu.memory_space<smem>>, %arg6: memref<2x5xf32, #tpu.memory_space<vmem>>) attributes {dimension_semantics = [#tpu.dimension_semantics<parallel>], iteration_bounds = array<i64: 1>, scalar_prefetch = 0 : i64, scratch_operands = 0 : i64, tpu.core_type = #tpu.core_type<tc>, window_params = [{transform_indices = @transform_0, window_bounds = array<i64: 5, 4>}, {pipeline_mode = #tpu.pipeline_mode<synchronous>, transform_indices = @transform_1, window_bounds = array<i64: 32, 4>}, {pipeline_mode = #tpu.pipeline_mode<synchronous>, transform_indices = @transform_2, window_bounds = array<i64: 1, 32, 32>}, {pipeline_mode = #tpu.pipeline_mode<synchronous>, transform_indices = @transform_3, window_bounds = array<i64: 2, 32>}, {transform_indices = @transform_4, window_bounds = array<i64: 2>}, {transform_indices = @transform_5, window_bounds = array<i64: 2, 5>}]} {
    %c0 = arith.constant 0 : index
    %c0_0 = arith.constant 0 : index
    %0 = vector.load %arg2[%c0, %c0_0] : memref<32x4xf32, #tpu.memory_space<vmem>>, vector<32x4xf32>
    %c0_1 = arith.constant 0 : index
    %c0_2 = arith.constant 0 : index
    %1 = vector.load %arg1[%c0_1, %c0_2] : memref<5x4xf32, #tpu.memory_space<vmem>>, vector<5x4xf32>
    %cst = arith.constant dense<0.000000e+00> : vector<32x5xf32>
    %2 = tpu.matmul %0, %1, %cst {dimension_numbers = #tpu.dot_dimension_numbers<[1], [1], [0], [0], [0, 0, 1, 0], [], []>} : vector<32x4xf32>, vector<5x4xf32>, vector<32x5xf32> -> vector<32x5xf32>
    %cst_3 = arith.constant 0.000000e+00 : f32
    %3 = vector.broadcast %cst_3 : f32 to vector<32x5xf32>
    %4 = arith.maximumf %2, %3 : vector<32x5xf32>
    %c0_4 = arith.constant 0 : index
    %c0_5 = arith.constant 0 : index
    %c0_6 = arith.constant 0 : index
    %5 = vector.load %arg3[%c0_4, %c0_5, %c0_6] : memref<1x32x32xf32, #tpu.memory_space<vmem>>, vector<1x32x32xf32>
    %6 = vector.shape_cast %5 : vector<1x32x32xf32> to vector<32x32xf32>
    %cst_7 = arith.constant dense<0.000000e+00> : vector<32x5xf32>
    %7 = tpu.matmul %6, %4, %cst_7 {dimension_numbers = #tpu.dot_dimension_numbers<[1], [0], [0], [1], [0, 0, 1, 1], [], []>} : vector<32x32xf32>, vector<32x5xf32>, vector<32x5xf32> -> vector<32x5xf32>
    %cst_8 = arith.constant 0.000000e+00 : f32
    %8 = vector.broadcast %cst_8 : f32 to vector<32x5xf32>
    %9 = arith.maximumf %7, %8 : vector<32x5xf32>
    %c0_9 = arith.constant 0 : index
    %c0_10 = arith.constant 0 : index
    %10 = vector.load %arg4[%c0_9, %c0_10] : memref<2x32xf32, #tpu.memory_space<vmem>>, vector<2x32xf32>
    %cst_11 = arith.constant dense<0.000000e+00> : vector<2x5xf32>
    %11 = tpu.matmul %10, %9, %cst_11 {dimension_numbers = #tpu.dot_dimension_numbers<[1], [0], [0], [1], [0, 0, 1, 1], [], []>} : vector<2x32xf32>, vector<32x5xf32>, vector<2x5xf32> -> vector<2x5xf32>
    %12 = vector.extract_strided_slice %11 {offsets = [1, 0], sizes = [1, 5], strides = [1, 1]} : vector<2x5xf32> to vector<1x5xf32>
    %13 = vector.extract_strided_slice %11 {offsets = [0, 0], sizes = [1, 5], strides = [1, 1]} : vector<2x5xf32> to vector<1x5xf32>
    %14 = arith.subf %12, %13 : vector<1x5xf32>
    %c1 = arith.constant 1 : index
    %15 = memref.load %arg5[%c1] : memref<2xf32, #tpu.memory_space<smem>>
    %c0_12 = arith.constant 0 : index
    %16 = memref.load %arg5[%c0_12] : memref<2xf32, #tpu.memory_space<smem>>
    %17 = arith.subf %15, %16 : f32
    %18 = vector.broadcast %17 : f32 to vector<1x5xf32>
    %19 = arith.addf %14, %18 : vector<1x5xf32>
    %cst_13 = arith.constant 0.000000e+00 : f32
    %20 = vector.broadcast %cst_13 : f32 to vector<1x5xf32>
    %21 = arith.subf %20, %19 : vector<1x5xf32>
    %22 = math.exp %21 : vector<1x5xf32>
    %cst_14 = arith.constant 1.000000e+00 : f32
    %23 = vector.broadcast %cst_14 : f32 to vector<1x5xf32>
    %24 = arith.addf %23, %22 : vector<1x5xf32>
    %cst_15 = arith.constant 1.000000e+00 : f32
    %25 = vector.broadcast %cst_15 : f32 to vector<1x5xf32>
    %26 = arith.divf %25, %24 : vector<1x5xf32>
    %cst_16 = arith.constant 1.000000e+00 : f32
    %27 = vector.broadcast %cst_16 : f32 to vector<1x5xf32>
    %28 = arith.subf %27, %26 : vector<1x5xf32>
    %c0_17 = arith.constant 0 : index
    %c0_18 = arith.constant 0 : index
    %29 = vector.load %arg6[%c0_17, %c0_18] : memref<2x5xf32, #tpu.memory_space<vmem>>, vector<1x5xf32>
    tpu.vector_store %arg6[%c0_17, %c0_18], %28 {strides = array<i32>} : memref<2x5xf32, #tpu.memory_space<vmem>>, vector<1x5xf32>,
    %c1_19 = arith.constant 1 : index
    %c0_20 = arith.constant 0 : index
    %30 = vector.load %arg6[%c1_19, %c0_20] : memref<2x5xf32, #tpu.memory_space<vmem>>, vector<1x5xf32>
    tpu.vector_store %arg6[%c1_19, %c0_20], %26 {strides = array<i32>} : memref<2x5xf32, #tpu.memory_space<vmem>>, vector<1x5xf32>,
    return
  }
  func.func @transform_0(%arg0: i32) -> (i32, i32) {
    %c0_i32 = arith.constant 0 : i32
    %c0_i32_0 = arith.constant 0 : i32
    return %arg0, %c0_i32 : i32, i32
  }
  func.func @transform_1(%arg0: i32) -> (i32, i32) {
    %c0_i32 = arith.constant 0 : i32
    %c0_i32_0 = arith.constant 0 : i32
    %c0_i32_1 = arith.constant 0 : i32
    return %c0_i32, %c0_i32_0 : i32, i32
  }
  func.func @transform_2(%arg0: i32) -> (i32, i32, i32) {
    %c0_i32 = arith.constant 0 : i32
    %c0_i32_0 = arith.constant 0 : i32
    %c0_i32_1 = arith.constant 0 : i32
    %c0_i32_2 = arith.constant 0 : i32
    return %c0_i32, %c0_i32_0, %c0_i32_1 : i32, i32, i32
  }
  func.func @transform_3(%arg0: i32) -> (i32, i32) {
    %c0_i32 = arith.constant 0 : i32
    %c0_i32_0 = arith.constant 0 : i32
    %c0_i32_1 = arith.constant 0 : i32
    return %c0_i32, %c0_i32_0 : i32, i32
  }
  func.func @transform_4(%arg0: i32) -> i32 {
    %c0_i32 = arith.constant 0 : i32
    %c0_i32_0 = arith.constant 0 : i32
    return %c0_i32 : i32
  }
  func.func @transform_5(%arg0: i32) -> (i32, i32) {
    %c0_i32 = arith.constant 0 : i32
    %c0_i32_0 = arith.constant 0 : i32
    return %c0_i32, %arg0 : i32, i32
  }
}

</mosaic_0001>

<bundles_post_ra>
// kernel: tpu_custom_call.1
= control target key start
LH: loop header
LB: loop body
LE: loop exit
PB: predicated region body
PF: predicated region fallthrough
CT: control target
= control target key end

     0   :  { %10 = vsyncpa [#allocation4], 0  ;;  %s566_s0 = inlined_call_operand.vmem [shape: f32[5,4], index: 0, kind: input, shape index: {}]   ;;  %s567_s1 = inlined_call_operand.vmem [shape: f32[32,4], index: 1, kind: input, shape index: {}]   ;;  %s568_s2 = inlined_call_operand.vmem [shape: f32[1,32,32], index: 2, kind: input, shape index: {}]   ;;  %s569_s3 = inlined_call_operand.vmem [shape: f32[2,32], index: 3, kind: input, shape index: {}]   ;;  %s570_s4 = inlined_call_operand.vmem [shape: f32[2], index: 4, kind: input, shape index: {}]   ;;  %s571_s5 = inlined_call_operand.hbm [shape: f32[2,5], index: 5, kind: output, shape index: {}]  }
   0x1   :  { %11 = vsyncpa [#allocation3], 0  ;;  %s26_s20 = sshll.u32 %s570_s4, 4  ;;  %s27_s20 = int_to_ptr.vmem [resolvable:$true] %s26_s20 }
   0x2   :  { %s443_s21 = scalar_lea.vmem %s27_s20, 16  ;;  %p448_p1 = scmp.lt.s32.totalorder %s27_s20, %s27_s20 }
   0x3   :  { %p444_p0 = scmp.ne.s32.totalorder %s27_s20, %s443_s21  ;;  %p449_p2 = scmp.lt.s32.totalorder %s443_s21, %s443_s21 }
   0x5   :  { %p450_p3 = por %p449_p2, %p448_p1 }
   0x7   :  { %p451_p4 = pnand %p450_p3, %p444_p0 }
   0x9   :  { %454 = shalt.err (!%p451_p4)
}
   0xa   :  { %s481_s22 = smov [#allocation2]  }
   0xb   :  { %29 = dma.vmem_to_smem %s27_s20, 16, %s481_s22, [#allocation4]  }
   0xc   :  { %477 = dma.done.wait [#allocation4], 16  }
   0xd   :  { %478 = vsyncadd [#allocation4], 4294967280 }
   0xe   :  { %33 = sfence }
   0xf   :  { %v38_v0 = vld [vmem:[%s566_s0] sm:$0x1f]  ;;  %vm39_vm0 = vcmask 31744   ;;  %v35_v2 = vld [vmem:[%s567_s1 + $0x8] sm:$0xff]  ;;  %v36_v3 = vld [vmem:[%s567_s1 + $0x10] sm:$0xff]  ;;  %vm148_vm1 = vcmask 261120  }
  0x10   :  { %v34_v1 = vld [vmem:[%s567_s1] sm:$0xff]  ;;  %387 = vmatprep.subr.msk.mxu0 %vm39_vm0, %v38_v0  ;;  %v37_v4 = vld [vmem:[%s567_s1 + $0x18] sm:$0xff]  ;;  %v145_v16 = vld [vmem:[%s568_s2 + $0x8] sm:$0xff]  ;;  %v482_v19 = vmov 0.0|0.0   ;;  %vm483_vm2 = vmmov 0   ;;  %v484_v20 = vmov 0.0  }
  0x11   :  { %389 = vmatprep.mubr.msk.f32.mxu0 %vm39_vm0, %v34_v1  ;;  %388 = vmatpush3.xpose.msk.msra.mxu0 %vm39_vm0, %v38_v0  ;;  %v144_v5 = vld [vmem:[%s568_s2] sm:$0xff]  ;;  %v146_v17 = vld [vmem:[%s568_s2 + $0x10] sm:$0xff]  ;;  %v147_v18 = vld [vmem:[%s568_s2 + $0x18] sm:$0xff]  ;;  %s368_s14 = sld [smem:[#allocation2 + $0x1]]  ;;  %s329_s15 = sld [smem:[#allocation2]]  ;;  %vm340_vm3 = vcmask 33793  }
  0x12   :  { %403 = vmatprep.mubr.msk.f32.mxu1 %vm148_vm1, %v144_v5  ;;  %428 = vmatprep.subr.bf16.mxu0 %v482_v19  ;;  %v250_v31 = vld [vmem:[%s569_s3] sm:$0x3]  ;;  %s485_s17 = smov [#allocation5]  }
  0x13   :  { %s349_s3 = sshll.u32 %s485_s17, 4  ;;  %s350_s3 = int_to_ptr.vmem [resolvable:$true] %s349_s3 }
  0x14   :  { %390 = vmatmul.mubr.msk.f32.vlgmr.msra.gmra.mrb[0].mxu0 %vm39_vm0, %v35_v2  ;;  %s455_s18 = scalar_lea.vmem %s350_s3, 32  ;;  %p460_p6 = scmp.lt.s32.totalorder %s350_s3, %s350_s3 }
  0x15   :  { %392 = vmatprep.mubr.msk.f32.mxu0 %vm39_vm0, %v36_v3  ;;  %p456_p5 = scmp.ne.s32.totalorder %s350_s3, %s455_s18  ;;  %p461_p7 = scmp.lt.s32.totalorder %s455_s18, %s455_s18 }
  0x17   :  { %s330_s16 = ssub.f32 %s368_s14, %s329_s15  ;;  %p462_p8 = por %p461_p7, %p460_p6 }
  0x18   :  { %393 = vmatmul.mubr.msk.f32.gmra.mrb[2].mxu0 %vm39_vm0, %v37_v4 }
  0x19   :  { %417 = vmatprep.mubr.msk.f32.mxu0 %vm483_vm2, %v484_v20  ;;  %v331_v35 = vstv %s330_s16  ;;  %p463_p9 = pnand %p462_p8, %p456_p5 }
  0xe7   :  { %v391_v6 = vpop.f32.mrb[0].mxu0 }
  0xe8   :  { %v141_v7 = vmax.f32 %v391_v6, 0.0  ;;  %v121_v8 = vpop.f32.mrb[1].mxu0 }
  0xe9   :  { %v140_v9 = vmax.f32 %v121_v8, 0.0 }
  0xeb   :  { %v394_v10 = vpop.f32.mrb[2].mxu0  ;;  %v420_v11 = vpack.c.bf16 %v141_v7, %v140_v9 }
  0xec   :  { %v143_v12 = vmax.f32 %v394_v10, 0.0  ;;  %v131_v13 = vpop.f32.mrb[3].mxu0 }
  0xed   :  { %v142_v14 = vmax.f32 %v131_v13, 0.0  ;;  %421 = vmatprep.subr.bf16.mxu1 %v420_v11 }
  0xee   :  { %423 = vmatpush3.bf16.msra.mxu1 %v420_v11 }
  0xef   :  { %v424_v15 = vpack.c.bf16 %v143_v12, %v142_v14 }
  0xf1   :  { %425 = vmatprep.subr.bf16.mxu1 %v424_v15 }
  0xf2   :  { %427 = vmatpush3.bf16.msra.mxu1 %v424_v15 }
  0xf5   :  { %404 = vmatmul.mubr.msk.f32.vlgmr.msra.gmra.mrb[0].mxu1 %vm148_vm1, %v145_v16 }
  0xf6   :  { %406 = vmatprep.mubr.msk.f32.mxu1 %vm148_vm1, %v146_v17 }
  0xf9   :  { %407 = vmatmul.mubr.msk.f32.gmra.mrb[2].mxu1 %vm148_vm1, %v147_v18 }
 0x1c8   :  { %v405_v21 = vpop.f32.mrb[0].mxu1 }
 0x1c9   :  { %v247_v22 = vmax.f32 %v405_v21, 0.0  ;;  %v227_v23 = vpop.f32.mrb[1].mxu1 }
 0x1ca   :  { %v246_v24 = vmax.f32 %v227_v23, 0.0 }
 0x1cc   :  { %v429_v25 = vpack.c.bf16 %v247_v22, %v246_v24  ;;  %v408_v26 = vpop.f32.mrb[2].mxu1 }
 0x1cd   :  { %v249_v27 = vmax.f32 %v408_v26, 0.0  ;;  %v237_v28 = vpop.f32.mrb[3].mxu1 }
 0x1ce   :  { %v248_v29 = vmax.f32 %v237_v28, 0.0  ;;  %430 = vmatpush3.bf16.msra.mxu0 %v429_v25 }
 0x1cf   :  { %431 = vmatprep.subr.bf16.mxu0 %v482_v19 }
 0x1d0   :  { %v432_v30 = vpack.c.bf16 %v249_v27, %v248_v29 }
 0x1d2   :  { %433 = vmatpush3.bf16.msra.mxu0 %v432_v30 }
 0x1d5   :  { %418 = vmatmul.mubr.msk.f32.vlgmr.msra.gmra.mrb[4].mxu0 %vm148_vm1, %v250_v31 }
 0x2a8   :  { %v320_v32 = vpop.f32.mrb[4].mxu0 }
 0x2a9   :  { %v325_v33 = vrot.slane %v320_v32, 7  ;;  %v419_v34 = vpop.f32.mrb[5].mxu0 }
 0x2ab   :  { %v327_v36 = vsub.f32 %v320_v32, %v325_v33 }
 0x2ad   :  { %v332_v37 = vadd.f32 %v331_v35, %v327_v36 }
 0x2af   :  { %v333_v38 = vsub.f32 0.0, %v332_v37 }
 0x2b1   :  { %v334_v39 = vmul.f32 1.442695, %v333_v38 }
 0x2b3   :  { %439 = vpow2.f32 %v334_v39 }
 0x2bd   :  { %v440_v40 = vpop.eup %439 }
 0x2be   :  { %v336_v41 = vadd.f32 1.0, %v440_v40 }
 0x2c0   :  { %441 = vrcp.f32 %v336_v41 }
 0x2ca   :  { %v442_v42 = vpop.eup %441 }
 0x2cb   :  { %v339_v43 = vsub.f32 1.0, %v442_v42  ;;  %342 = vst.msk [vmem:[#allocation5] sm:$0x2] %vm340_vm3, %v442_v42 }
 0x2cd   :  { %341 = vst.msk [vmem:[#allocation5 - $0x1] sm:$0x2] %vm340_vm3, %v339_v43 }
 0x2ce   :  { %466 = shalt.err (!%p463_p9)
}
 0x2cf   :  { %s467_s21 = scalar_lea.hbm %s571_s5, 32 }
 0x2d0   :  { %p468_p10 = scmp.ne.s32.totalorder %s571_s5, %s467_s21  ;;  %p471_p11 = scmp.lt.u32.totalorder %s467_s21, %s571_s5 }
 0x2d2   :  { %p473_p12 = pnand %p471_p11, %p468_p10 }
 0x2d4   :  { %476 = shalt.err (!%p473_p12)
}
 0x2d5   :  { %352 = dma.vmem_to_hbm [thread:$0]  %s350_s3, 32, %s571_s5, [#allocation3]  }
 0x2d6   :  { %479 = dma.done.wait [#allocation3], 32  }
 0x2d7   :  { %480 = vsyncadd [#allocation3], 4294967264 }
 0x2d8   :  { %356 = vsyncpa [#allocation3], 1 }
 0x2d9   :  { %357 = vsyncpa [#allocation4], 1 }

</bundles_post_ra>
